<compile_context>
chip_gen: v7x
topology: tpu7x:2x2x1
jax: 0.10.0
libtpu: 0.0.40
codegen_flags: <defaults>
</compile_context>

<pallas_src>
import functools

import jax
import jax.numpy as jnp
from jax.experimental import pallas as pl
from jax.experimental.pallas import tpu as pltpu

NEG_SLOPE = 0.01  # F.leaky_relu default negative_slope


def _round_up(x, m):
    return ((x + m - 1) // m) * m


def _detect_tpu():
    """Return (per-core VMEM bytes, TensorCores per chip). Python-level, once."""
    vmem_bytes = None
    try:
        info = pltpu.get_tpu_info()
        vmem_bytes = int(info.vmem_capacity_bytes)
    except Exception:
        vmem_bytes = None

    kind = ""
    try:
        kind = jax.devices()[0].device_kind.lower()
    except Exception:
        pass

    if "v7" in kind:
        num_tc = 2
        default_vmem = 64 << 20
    elif "v5" in kind or "v6" in kind:
        num_tc = 1
        default_vmem = 128 << 20
    else:
        num_tc = 1
        default_vmem = 64 << 20  # conservative fallback

    if not vmem_bytes or vmem_bytes <= 0:
        vmem_bytes = default_vmem
    return vmem_bytes, num_tc


_VMEM_BYTES, _NUM_TC = _detect_tpu()
_VMEM_HEADROOM = 8 << 20  # Mosaic internal scratch + pipeline slack


def bignet_kernel(x_ref,
                  w1, b1, w2, b2, w3, b3, w4, b4,
                  w5, b5, w6, b6, w7, b7, w8, b8,
                  o_ref):
    """Full 8-layer MLP on one batch tile, entirely in VMEM."""
    h = x_ref[...].astype(jnp.bfloat16)

    def layer(h_bf16, w_ref, b_ref, activate=True):
        # bf16 MXU matmul, f32 accumulate; bias + leaky_relu in f32 (VPU-safe
        # on v5e); pack back to bf16 once before the next matmul.
        y = jnp.dot(h_bf16, w_ref[...],
                    preferred_element_type=jnp.float32) + b_ref[...]
        if activate:
            y = jnp.maximum(y, NEG_SLOPE * y)     # leaky_relu, 2 VALU ops
            return y.astype(jnp.bfloat16)
        return y

    h = layer(h, w1, b1)   # l1 + leaky_relu   (dropout1 = identity, eval)
    h = layer(h, w2, b2)   # l2 + leaky_relu   (dropout2 = identity)
    h = layer(h, w3, b3)   # l3 + leaky_relu   (dropout3 = identity)
    h = layer(h, w4, b4)   # l4 + leaky_relu   (dropout4 = identity)
    h = layer(h, w5, b5)   # l5 + leaky_relu   (dropout5 = identity)
    h = layer(h, w6, b6)   # l6 + leaky_relu   (dropout6 = identity)
    h = layer(h, w7, b7)   # l7 + leaky_relu   (dropout7 = identity)
    h = layer(h, w8, b8, activate=False)         # l8 (no activation)

    o_ref[...] = h.astype(o_ref.dtype)


def prepare_bignet_params(params):
    """One-time preprocessing OUTSIDE the jitted forward.

    params: list of (W[in, out] f32, b f32).  Returns (flat, out_size) where
    flat = (w1_bf16, b1_f32, ..., w8_bf16, b8_f32) with the last layer padded
    to a lane-dense multiple of 128.
    """
    out_size = int(params[-1][0].shape[1])
    n_pad = _round_up(max(out_size, 128), 128)
    n_layers = len(params)
    flat = []
    for idx, (w, b) in enumerate(params):
        w = jnp.asarray(w, jnp.bfloat16)                 # MXU-native weights
        b = jnp.asarray(b, jnp.float32).reshape(1, -1)   # f32 bias broadcast row
        if idx == n_layers - 1 and n_pad != out_size:
            w = jnp.pad(w, ((0, 0), (0, n_pad - out_size)))
            b = jnp.pad(b, ((0, 0), (0, n_pad - out_size)))
        flat.append(w)
        flat.append(b)
    return tuple(flat), out_size


@functools.partial(jax.jit, static_argnames=("out_size", "batch_tile"))
def bignet_forward(x, flat, out_size, batch_tile=None):
    """x: [B, in_size] f32; flat: output of prepare_bignet_params."""
    B, in_size = x.shape
    n_layers = len(flat) // 2
    n_pad = flat[-2].shape[1]            # lane-padded output width

    if batch_tile is None:
        # 128 MiB-class chips (v5e/v6e) can afford bigger batch tiles.
        batch_tile = 512 if _VMEM_BYTES >= (96 << 20) else 256

    # ---- batch tile -------------------------------------------------------
    tile = max(8, min(_round_up(batch_tile, 8), _round_up(B, 8)))

    # Split the batch across grid steps only on multi-TC chips (v7x) and only
    # when there is enough compute per TC to amortize duplicating the resident
    # weight DMA into both cores' VMEM.  Keep tiles multiples of 16 (bf16
    # sublane packing) so the (8,128) BlockSpec constraint always holds.
    if _NUM_TC >= 2 and B >= 512 and _round_up(B, tile) // tile == 1 and tile >= 32:
        tile = max(16, _round_up(tile // 2, 16))

    # ---- VMEM budgeting (generation-aware) --------------------------------
    weight_bytes = sum(int(a.size) * a.dtype.itemsize for a in flat)
    max_hidden = max(flat[2 * i].shape[1] for i in range(n_layers))
    budget = _VMEM_BYTES - _VMEM_HEADROOM
    assert weight_bytes < budget, (
        "resident-weight design exceeds this chip's VMEM budget "
        f"({weight_bytes} B vs {budget} B); use a per-layer tiled kernel")

    def footprint(t):
        io = 2 * t * in_size * 4 + 2 * t * n_pad * 4          # x/out double-buffers
        act = t * max_hidden * (4 + 2) + t * n_pad * 4          # f32 acc + bf16 h temps
        return weight_bytes + io + act

    while tile > 8 and footprint(tile) > budget:
        tile = max(8, _round_up(tile // 2, 8))
    assert footprint(tile) <= budget, (
        "activation tile does not fit VMEM alongside resident weights")

    b_pad = _round_up(B, tile)
    grid_n = b_pad // tile
    if b_pad != B:
        x = jnp.pad(x, ((0, b_pad - B), (0, 0)))

    # "parallel" only pays off with >= 2 TensorCores and >= 2 grid steps;
    # otherwise keep "arbitrary" (avoids double weight DMA on v7x for small B).
    sem = "parallel" if (_NUM_TC >= 2 and grid_n >= 2) else "arbitrary"

    vmem_limit = int(min(_VMEM_BYTES - (4 << 20),
                         max(32 << 20, footprint(tile) + (8 << 20))))

    # ---- specs: batch tile walks the grid; weights/biases resident ---------
    in_specs = [pl.BlockSpec((tile, in_size), lambda i: (i, 0))]
    for a in flat:
        in_specs.append(
            pl.BlockSpec(a.shape, lambda i: (0, 0),
                         pipeline_mode=pl.Buffered(1)))

    # ---- cost estimate ------------------------------------------------------
    flops = 0
    k = in_size
    for li in range(n_layers):
        n = flat[2 * li].shape[1]
        flops += 2 * b_pad * k * n
        k = n
    bytes_accessed = int(b_pad * in_size * 4 + weight_bytes + b_pad * n_pad * 4)

    out = pl.pallas_call(
        bignet_kernel,
        out_shape=jax.ShapeDtypeStruct((b_pad, n_pad), jnp.float32),
        grid=(grid_n,),
        in_specs=in_specs,
        out_specs=pl.BlockSpec((tile, n_pad), lambda i: (i, 0)),
        compiler_params=pltpu.CompilerParams(
            dimension_semantics=(sem,),
            vmem_limit_bytes=vmem_limit),
        cost_estimate=pl.CostEstimate(
            flops=flops, transcendentals=0, bytes_accessed=bytes_accessed),
    )(x, *flat)

    return out[:B, :out_size]


def init_bignet_params(key, input_size, hidden_size, output_size):
    """nn.Linear-style U(-1/sqrt(fan_in), 1/sqrt(fan_in)) init; W stored [in, out]."""
    dims = [input_size] + [hidden_size] * 7 + [output_size]
    params = []
    for i in range(8):
        fan_in, fan_out = dims[i], dims[i + 1]
        key, kw, kb = jax.random.split(key, 3)
        bound = 1.0 / jnp.sqrt(fan_in)
        w = jax.random.uniform(kw, (fan_in, fan_out), jnp.float32, -bound, bound)
        b = jax.random.uniform(kb, (1, fan_out), jnp.float32, -bound, bound)
        params.append((w, b))
    return params


def bignet_reference(x, params):
    """Pure-JAX reference (eval-mode dropout) with the same bf16 matmul casting."""
    h = x.astype(jnp.bfloat16)
    for i, (w, b) in enumerate(params):
        y = jnp.dot(h, w.astype(jnp.bfloat16),
                    preferred_element_type=jnp.float32) + b.reshape(1, -1)
        if i < len(params) - 1:
            y = jnp.maximum(y, NEG_SLOPE * y)
            h = y.astype(jnp.bfloat16)
        else:
            h = y
    return h


if __name__ == "__main__":
    input_size, hidden_size, output_size = 32, 128, 16
    batch = 16

    key = jax.random.PRNGKey(0)
    key, kx = jax.random.split(key)
    x = jax.random.normal(kx, (batch, input_size), jnp.float32)
    params = init_bignet_params(key, input_size, hidden_size, output_size)

    # One-time weight preparation (bf16 cast, lane padding) OUTSIDE the jit.
    flat, out_size = prepare_bignet_params(params)

    out = bignet_forward(x, flat, out_size=out_size)
    out = jax.block_until_ready(out)

    ref = bignet_reference(x, params)
    assert out.shape == (batch, output_size)
    assert jnp.allclose(out, ref, atol=2e-2, rtol=2e-2), "mismatch vs reference"

    print("KERNEL_OK")
</pallas_src>

<mosaic_0001>
module attributes {stable_mosaic.version = 11 : i64} {
  func.func @bignet_kernel(%arg0: i32, %arg1: memref<16x32xf32, #tpu.memory_space<vmem>>, %arg2: memref<32x128xbf16, #tpu.memory_space<vmem>>, %arg3: memref<1x128xf32, #tpu.memory_space<vmem>>, %arg4: memref<128x128xbf16, #tpu.memory_space<vmem>>, %arg5: memref<1x128xf32, #tpu.memory_space<vmem>>, %arg6: memref<128x128xbf16, #tpu.memory_space<vmem>>, %arg7: memref<1x128xf32, #tpu.memory_space<vmem>>, %arg8: memref<128x128xbf16, #tpu.memory_space<vmem>>, %arg9: memref<1x128xf32, #tpu.memory_space<vmem>>, %arg10: memref<128x128xbf16, #tpu.memory_space<vmem>>, %arg11: memref<1x128xf32, #tpu.memory_space<vmem>>, %arg12: memref<128x128xbf16, #tpu.memory_space<vmem>>, %arg13: memref<1x128xf32, #tpu.memory_space<vmem>>, %arg14: memref<128x128xbf16, #tpu.memory_space<vmem>>, %arg15: memref<1x128xf32, #tpu.memory_space<vmem>>, %arg16: memref<128x128xbf16, #tpu.memory_space<vmem>>, %arg17: memref<1x128xf32, #tpu.memory_space<vmem>>, %arg18: memref<16x128xf32, #tpu.memory_space<vmem>>) attributes {dimension_semantics = [#tpu.dimension_semantics<arbitrary>], iteration_bounds = array<i64: 1>, scalar_prefetch = 0 : i64, scratch_operands = 0 : i64, tpu.core_type = #tpu.core_type<tc>, window_params = [{transform_indices = @transform_0, window_bounds = array<i64: 16, 32>}, {pipeline_mode = #tpu.pipeline_mode<synchronous>, transform_indices = @transform_1, window_bounds = array<i64: 32, 128>}, {pipeline_mode = #tpu.pipeline_mode<synchronous>, transform_indices = @transform_2, window_bounds = array<i64: 1, 128>}, {pipeline_mode = #tpu.pipeline_mode<synchronous>, transform_indices = @transform_3, window_bounds = array<i64: 128, 128>}, {pipeline_mode = #tpu.pipeline_mode<synchronous>, transform_indices = @transform_4, window_bounds = array<i64: 1, 128>}, {pipeline_mode = #tpu.pipeline_mode<synchronous>, transform_indices = @transform_5, window_bounds = array<i64: 128, 128>}, {pipeline_mode = #tpu.pipeline_mode<synchronous>, transform_indices = @transform_6, window_bounds = array<i64: 1, 128>}, {pipeline_mode = #tpu.pipeline_mode<synchronous>, transform_indices = @transform_7, window_bounds = array<i64: 128, 128>}, {pipeline_mode = #tpu.pipeline_mode<synchronous>, transform_indices = @transform_8, window_bounds = array<i64: 1, 128>}, {pipeline_mode = #tpu.pipeline_mode<synchronous>, transform_indices = @transform_9, window_bounds = array<i64: 128, 128>}, {pipeline_mode = #tpu.pipeline_mode<synchronous>, transform_indices = @transform_10, window_bounds = array<i64: 1, 128>}, {pipeline_mode = #tpu.pipeline_mode<synchronous>, transform_indices = @transform_11, window_bounds = array<i64: 128, 128>}, {pipeline_mode = #tpu.pipeline_mode<synchronous>, transform_indices = @transform_12, window_bounds = array<i64: 1, 128>}, {pipeline_mode = #tpu.pipeline_mode<synchronous>, transform_indices = @transform_13, window_bounds = array<i64: 128, 128>}, {pipeline_mode = #tpu.pipeline_mode<synchronous>, transform_indices = @transform_14, window_bounds = array<i64: 1, 128>}, {pipeline_mode = #tpu.pipeline_mode<synchronous>, transform_indices = @transform_15, window_bounds = array<i64: 128, 128>}, {pipeline_mode = #tpu.pipeline_mode<synchronous>, transform_indices = @transform_16, window_bounds = array<i64: 1, 128>}, {transform_indices = @transform_17, window_bounds = array<i64: 16, 128>}]} {
    %c0 = arith.constant 0 : index
    %c0_0 = arith.constant 0 : index
    %0 = vector.load %arg1[%c0, %c0_0] : memref<16x32xf32, #tpu.memory_space<vmem>>, vector<16x32xf32>
    %1 = arith.truncf %0 : vector<16x32xf32> to vector<16x32xbf16>
    %c0_1 = arith.constant 0 : index
    %c0_2 = arith.constant 0 : index
    %2 = vector.load %arg2[%c0_1, %c0_2] : memref<32x128xbf16, #tpu.memory_space<vmem>>, vector<32x128xbf16>
    %cst = arith.constant dense<0.000000e+00> : vector<16x128xf32>
    %3 = tpu.matmul %1, %2, %cst {dimension_numbers = #tpu.dot_dimension_numbers<[1], [0], [0], [1], [0, 0, 1, 1], [], []>} : vector<16x32xbf16>, vector<32x128xbf16>, vector<16x128xf32> -> vector<16x128xf32>
    %c0_3 = arith.constant 0 : index
    %c0_4 = arith.constant 0 : index
    %4 = vector.load %arg3[%c0_3, %c0_4] : memref<1x128xf32, #tpu.memory_space<vmem>>, vector<1x128xf32>
    %5 = vector.broadcast %4 : vector<1x128xf32> to vector<16x128xf32>
    %6 = arith.addf %3, %5 : vector<16x128xf32>
    %cst_5 = arith.constant 0.00999999977 : f32
    %7 = vector.broadcast %cst_5 : f32 to vector<16x128xf32>
    %8 = arith.mulf %7, %6 : vector<16x128xf32>
    %9 = arith.maximumf %6, %8 : vector<16x128xf32>
    %10 = arith.truncf %9 : vector<16x128xf32> to vector<16x128xbf16>
    %c0_6 = arith.constant 0 : index
    %c0_7 = arith.constant 0 : index
    %11 = vector.load %arg4[%c0_6, %c0_7] : memref<128x128xbf16, #tpu.memory_space<vmem>>, vector<128x128xbf16>
    %cst_8 = arith.constant dense<0.000000e+00> : vector<16x128xf32>
    %12 = tpu.matmul %10, %11, %cst_8 {dimension_numbers = #tpu.dot_dimension_numbers<[1], [0], [0], [1], [0, 0, 1, 1], [], []>} : vector<16x128xbf16>, vector<128x128xbf16>, vector<16x128xf32> -> vector<16x128xf32>
    %c0_9 = arith.constant 0 : index
    %c0_10 = arith.constant 0 : index
    %13 = vector.load %arg5[%c0_9, %c0_10] : memref<1x128xf32, #tpu.memory_space<vmem>>, vector<1x128xf32>
    %14 = vector.broadcast %13 : vector<1x128xf32> to vector<16x128xf32>
    %15 = arith.addf %12, %14 : vector<16x128xf32>
    %cst_11 = arith.constant 0.00999999977 : f32
    %16 = vector.broadcast %cst_11 : f32 to vector<16x128xf32>
    %17 = arith.mulf %16, %15 : vector<16x128xf32>
    %18 = arith.maximumf %15, %17 : vector<16x128xf32>
    %19 = arith.truncf %18 : vector<16x128xf32> to vector<16x128xbf16>
    %c0_12 = arith.constant 0 : index
    %c0_13 = arith.constant 0 : index
    %20 = vector.load %arg6[%c0_12, %c0_13] : memref<128x128xbf16, #tpu.memory_space<vmem>>, vector<128x128xbf16>
    %cst_14 = arith.constant dense<0.000000e+00> : vector<16x128xf32>
    %21 = tpu.matmul %19, %20, %cst_14 {dimension_numbers = #tpu.dot_dimension_numbers<[1], [0], [0], [1], [0, 0, 1, 1], [], []>} : vector<16x128xbf16>, vector<128x128xbf16>, vector<16x128xf32> -> vector<16x128xf32>
    %c0_15 = arith.constant 0 : index
    %c0_16 = arith.constant 0 : index
    %22 = vector.load %arg7[%c0_15, %c0_16] : memref<1x128xf32, #tpu.memory_space<vmem>>, vector<1x128xf32>
    %23 = vector.broadcast %22 : vector<1x128xf32> to vector<16x128xf32>
    %24 = arith.addf %21, %23 : vector<16x128xf32>
    %cst_17 = arith.constant 0.00999999977 : f32
    %25 = vector.broadcast %cst_17 : f32 to vector<16x128xf32>
    %26 = arith.mulf %25, %24 : vector<16x128xf32>
    %27 = arith.maximumf %24, %26 : vector<16x128xf32>
    %28 = arith.truncf %27 : vector<16x128xf32> to vector<16x128xbf16>
    %c0_18 = arith.constant 0 : index
    %c0_19 = arith.constant 0 : index
    %29 = vector.load %arg8[%c0_18, %c0_19] : memref<128x128xbf16, #tpu.memory_space<vmem>>, vector<128x128xbf16>
    %cst_20 = arith.constant dense<0.000000e+00> : vector<16x128xf32>
    %30 = tpu.matmul %28, %29, %cst_20 {dimension_numbers = #tpu.dot_dimension_numbers<[1], [0], [0], [1], [0, 0, 1, 1], [], []>} : vector<16x128xbf16>, vector<128x128xbf16>, vector<16x128xf32> -> vector<16x128xf32>
    %c0_21 = arith.constant 0 : index
    %c0_22 = arith.constant 0 : index
    %31 = vector.load %arg9[%c0_21, %c0_22] : memref<1x128xf32, #tpu.memory_space<vmem>>, vector<1x128xf32>
    %32 = vector.broadcast %31 : vector<1x128xf32> to vector<16x128xf32>
    %33 = arith.addf %30, %32 : vector<16x128xf32>
    %cst_23 = arith.constant 0.00999999977 : f32
    %34 = vector.broadcast %cst_23 : f32 to vector<16x128xf32>
    %35 = arith.mulf %34, %33 : vector<16x128xf32>
    %36 = arith.maximumf %33, %35 : vector<16x128xf32>
    %37 = arith.truncf %36 : vector<16x128xf32> to vector<16x128xbf16>
    %c0_24 = arith.constant 0 : index
    %c0_25 = arith.constant 0 : index
    %38 = vector.load %arg10[%c0_24, %c0_25] : memref<128x128xbf16, #tpu.memory_space<vmem>>, vector<128x128xbf16>
    %cst_26 = arith.constant dense<0.000000e+00> : vector<16x128xf32>
    %39 = tpu.matmul %37, %38, %cst_26 {dimension_numbers = #tpu.dot_dimension_numbers<[1], [0], [0], [1], [0, 0, 1, 1], [], []>} : vector<16x128xbf16>, vector<128x128xbf16>, vector<16x128xf32> -> vector<16x128xf32>
    %c0_27 = arith.constant 0 : index
    %c0_28 = arith.constant 0 : index
    %40 = vector.load %arg11[%c0_27, %c0_28] : memref<1x128xf32, #tpu.memory_space<vmem>>, vector<1x128xf32>
    %41 = vector.broadcast %40 : vector<1x128xf32> to vector<16x128xf32>
    %42 = arith.addf %39, %41 : vector<16x128xf32>
    %cst_29 = arith.constant 0.00999999977 : f32
    %43 = vector.broadcast %cst_29 : f32 to vector<16x128xf32>
    %44 = arith.mulf %43, %42 : vector<16x128xf32>
    %45 = arith.maximumf %42, %44 : vector<16x128xf32>
    %46 = arith.truncf %45 : vector<16x128xf32> to vector<16x128xbf16>
    %c0_30 = arith.constant 0 : index
    %c0_31 = arith.constant 0 : index
    %47 = vector.load %arg12[%c0_30, %c0_31] : memref<128x128xbf16, #tpu.memory_space<vmem>>, vector<128x128xbf16>
    %cst_32 = arith.constant dense<0.000000e+00> : vector<16x128xf32>
    %48 = tpu.matmul %46, %47, %cst_32 {dimension_numbers = #tpu.dot_dimension_numbers<[1], [0], [0], [1], [0, 0, 1, 1], [], []>} : vector<16x128xbf16>, vector<128x128xbf16>, vector<16x128xf32> -> vector<16x128xf32>
    %c0_33 = arith.constant 0 : index
    %c0_34 = arith.constant 0 : index
    %49 = vector.load %arg13[%c0_33, %c0_34] : memref<1x128xf32, #tpu.memory_space<vmem>>, vector<1x128xf32>
    %50 = vector.broadcast %49 : vector<1x128xf32> to vector<16x128xf32>
    %51 = arith.addf %48, %50 : vector<16x128xf32>
    %cst_35 = arith.constant 0.00999999977 : f32
    %52 = vector.broadcast %cst_35 : f32 to vector<16x128xf32>
    %53 = arith.mulf %52, %51 : vector<16x128xf32>
    %54 = arith.maximumf %51, %53 : vector<16x128xf32>
    %55 = arith.truncf %54 : vector<16x128xf32> to vector<16x128xbf16>
    %c0_36 = arith.constant 0 : index
    %c0_37 = arith.constant 0 : index
    %56 = vector.load %arg14[%c0_36, %c0_37] : memref<128x128xbf16, #tpu.memory_space<vmem>>, vector<128x128xbf16>
    %cst_38 = arith.constant dense<0.000000e+00> : vector<16x128xf32>
    %57 = tpu.matmul %55, %56, %cst_38 {dimension_numbers = #tpu.dot_dimension_numbers<[1], [0], [0], [1], [0, 0, 1, 1], [], []>} : vector<16x128xbf16>, vector<128x128xbf16>, vector<16x128xf32> -> vector<16x128xf32>
    %c0_39 = arith.constant 0 : index
    %c0_40 = arith.constant 0 : index
    %58 = vector.load %arg15[%c0_39, %c0_40] : memref<1x128xf32, #tpu.memory_space<vmem>>, vector<1x128xf32>
    %59 = vector.broadcast %58 : vector<1x128xf32> to vector<16x128xf32>
    %60 = arith.addf %57, %59 : vector<16x128xf32>
    %cst_41 = arith.constant 0.00999999977 : f32
    %61 = vector.broadcast %cst_41 : f32 to vector<16x128xf32>
    %62 = arith.mulf %61, %60 : vector<16x128xf32>
    %63 = arith.maximumf %60, %62 : vector<16x128xf32>
    %64 = arith.truncf %63 : vector<16x128xf32> to vector<16x128xbf16>
    %c0_42 = arith.constant 0 : index
    %c0_43 = arith.constant 0 : index
    %65 = vector.load %arg16[%c0_42, %c0_43] : memref<128x128xbf16, #tpu.memory_space<vmem>>, vector<128x128xbf16>
    %cst_44 = arith.constant dense<0.000000e+00> : vector<16x128xf32>
    %66 = tpu.matmul %64, %65, %cst_44 {dimension_numbers = #tpu.dot_dimension_numbers<[1], [0], [0], [1], [0, 0, 1, 1], [], []>} : vector<16x128xbf16>, vector<128x128xbf16>, vector<16x128xf32> -> vector<16x128xf32>
    %c0_45 = arith.constant 0 : index
    %c0_46 = arith.constant 0 : index
    %67 = vector.load %arg17[%c0_45, %c0_46] : memref<1x128xf32, #tpu.memory_space<vmem>>, vector<1x128xf32>
    %68 = vector.broadcast %67 : vector<1x128xf32> to vector<16x128xf32>
    %69 = arith.addf %66, %68 : vector<16x128xf32>
    %c0_47 = arith.constant 0 : index
    %c0_48 = arith.constant 0 : index
    %70 = vector.load %arg18[%c0_47, %c0_48] : memref<16x128xf32, #tpu.memory_space<vmem>>, vector<16x128xf32>
    tpu.vector_store %arg18[%c0_47, %c0_48], %69 {strides = array<i32>} : memref<16x128xf32, #tpu.memory_space<vmem>>, vector<16x128xf32>,
    return
  }
  func.func @transform_0(%arg0: i32) -> (i32, i32) {
    %c0_i32 = arith.constant 0 : i32
    %c0_i32_0 = arith.constant 0 : i32
    return %arg0, %c0_i32 : i32, i32
  }
  func.func @transform_1(%arg0: i32) -> (i32, i32) {
    %c0_i32 = arith.constant 0 : i32
    %c0_i32_0 = arith.constant 0 : i32
    %c0_i32_1 = arith.constant 0 : i32
    return %c0_i32, %c0_i32_0 : i32, i32
  }
  func.func @transform_2(%arg0: i32) -> (i32, i32) {
    %c0_i32 = arith.constant 0 : i32
    %c0_i32_0 = arith.constant 0 : i32
    %c0_i32_1 = arith.constant 0 : i32
    return %c0_i32, %c0_i32_0 : i32, i32
  }
  func.func @transform_3(%arg0: i32) -> (i32, i32) {
    %c0_i32 = arith.constant 0 : i32
    %c0_i32_0 = arith.constant 0 : i32
    %c0_i32_1 = arith.constant 0 : i32
    return %c0_i32, %c0_i32_0 : i32, i32
  }
  func.func @transform_4(%arg0: i32) -> (i32, i32) {
    %c0_i32 = arith.constant 0 : i32
    %c0_i32_0 = arith.constant 0 : i32
    %c0_i32_1 = arith.constant 0 : i32
    return %c0_i32, %c0_i32_0 : i32, i32
  }
  func.func @transform_5(%arg0: i32) -> (i32, i32) {
    %c0_i32 = arith.constant 0 : i32
    %c0_i32_0 = arith.constant 0 : i32
    %c0_i32_1 = arith.constant 0 : i32
    return %c0_i32, %c0_i32_0 : i32, i32
  }
  func.func @transform_6(%arg0: i32) -> (i32, i32) {
    %c0_i32 = arith.constant 0 : i32
    %c0_i32_0 = arith.constant 0 : i32
    %c0_i32_1 = arith.constant 0 : i32
    return %c0_i32, %c0_i32_0 : i32, i32
  }
  func.func @transform_7(%arg0: i32) -> (i32, i32) {
    %c0_i32 = arith.constant 0 : i32
    %c0_i32_0 = arith.constant 0 : i32
    %c0_i32_1 = arith.constant 0 : i32
    return %c0_i32, %c0_i32_0 : i32, i32
  }
  func.func @transform_8(%arg0: i32) -> (i32, i32) {
    %c0_i32 = arith.constant 0 : i32
    %c0_i32_0 = arith.constant 0 : i32
    %c0_i32_1 = arith.constant 0 : i32
    return %c0_i32, %c0_i32_0 : i32, i32
  }
  func.func @transform_9(%arg0: i32) -> (i32, i32) {
    %c0_i32 = arith.constant 0 : i32
    %c0_i32_0 = arith.constant 0 : i32
    %c0_i32_1 = arith.constant 0 : i32
    return %c0_i32, %c0_i32_0 : i32, i32
  }
  func.func @transform_10(%arg0: i32) -> (i32, i32) {
    %c0_i32 = arith.constant 0 : i32
    %c0_i32_0 = arith.constant 0 : i32
    %c0_i32_1 = arith.constant 0 : i32
    return %c0_i32, %c0_i32_0 : i32, i32
  }
  func.func @transform_11(%arg0: i32) -> (i32, i32) {
    %c0_i32 = arith.constant 0 : i32
    %c0_i32_0 = arith.constant 0 : i32
    %c0_i32_1 = arith.constant 0 : i32
    return %c0_i32, %c0_i32_0 : i32, i32
  }
  func.func @transform_12(%arg0: i32) -> (i32, i32) {
    %c0_i32 = arith.constant 0 : i32
    %c0_i32_0 = arith.constant 0 : i32
    %c0_i32_1 = arith.constant 0 : i32
    return %c0_i32, %c0_i32_0 : i32, i32
  }
  func.func @transform_13(%arg0: i32) -> (i32, i32) {
    %c0_i32 = arith.constant 0 : i32
    %c0_i32_0 = arith.constant 0 : i32
    %c0_i32_1 = arith.constant 0 : i32
    return %c0_i32, %c0_i32_0 : i32, i32
  }
  func.func @transform_14(%arg0: i32) -> (i32, i32) {
    %c0_i32 = arith.constant 0 : i32
    %c0_i32_0 = arith.constant 0 : i32
    %c0_i32_1 = arith.constant 0 : i32
    return %c0_i32, %c0_i32_0 : i32, i32
  }
  func.func @transform_15(%arg0: i32) -> (i32, i32) {
    %c0_i32 = arith.constant 0 : i32
    %c0_i32_0 = arith.constant 0 : i32
    %c0_i32_1 = arith.constant 0 : i32
    return %c0_i32, %c0_i32_0 : i32, i32
  }
  func.func @transform_16(%arg0: i32) -> (i32, i32) {
    %c0_i32 = arith.constant 0 : i32
    %c0_i32_0 = arith.constant 0 : i32
    %c0_i32_1 = arith.constant 0 : i32
    return %c0_i32, %c0_i32_0 : i32, i32
  }
  func.func @transform_17(%arg0: i32) -> (i32, i32) {
    %c0_i32 = arith.constant 0 : i32
    %c0_i32_0 = arith.constant 0 : i32
    return %arg0, %c0_i32 : i32, i32
  }
}

</mosaic_0001>

<bundles_post_ra>
// kernel: bignet_forward.1
= control target key start
LH: loop header
LB: loop body
LE: loop exit
PB: predicated region body
PF: predicated region fallthrough
CT: control target
= control target key end

     0   :  { %s2034_s0 = inlined_call_operand.hbm [shape: f32[16,32], index: 0, kind: input, shape index: {}]   ;;  %s2035_s1 = inlined_call_operand.hbm [shape: bf16[32,128], index: 1, kind: input, shape index: {}]   ;;  %s2036_s2 = inlined_call_operand.vmem [shape: f32[1,128], index: 2, kind: input, shape index: {}]   ;;  %s2037_s3 = inlined_call_operand.hbm [shape: bf16[128,128], index: 3, kind: input, shape index: {}]   ;;  %s2038_s4 = inlined_call_operand.vmem [shape: f32[1,128], index: 4, kind: input, shape index: {}]   ;;  %s2039_s5 = inlined_call_operand.hbm [shape: bf16[128,128], index: 5, kind: input, shape index: {}]   ;;  %s2040_s6 = inlined_call_operand.vmem [shape: f32[1,128], index: 6, kind: input, shape index: {}]   ;;  %s2041_s7 = inlined_call_operand.hbm [shape: bf16[128,128], index: 7, kind: input, shape index: {}]   ;;  %s2042_s8 = inlined_call_operand.vmem [shape: f32[1,128], index: 8, kind: input, shape index: {}]   ;;  %s2043_s9 = inlined_call_operand.hbm [shape: bf16[128,128], index: 9, kind: input, shape index: {}]   ;;  %s2044_s10 = inlined_call_operand.vmem [shape: f32[1,128], index: 10, kind: input, shape index: {}]   ;;  %s2045_s11 = inlined_call_operand.hbm [shape: bf16[128,128], index: 11, kind: input, shape index: {}]   ;;  %s2046_s12 = inlined_call_operand.vmem [shape: f32[1,128], index: 12, kind: input, shape index: {}]   ;;  %s2047_s13 = inlined_call_operand.hbm [shape: bf16[128,128], index: 13, kind: input, shape index: {}]   ;;  %s2048_s14 = inlined_call_operand.vmem [shape: f32[1,128], index: 14, kind: input, shape index: {}]   ;;  %s2049_s15 = inlined_call_operand.hbm [shape: bf16[128,128], index: 15, kind: input, shape index: {}]   ;;  %s2050_s16 = inlined_call_operand.vmem [shape: f32[1,128], index: 16, kind: input, shape index: {}]   ;;  %s2051_s17 = inlined_call_operand.hbm [shape: f32[16,128], index: 17, kind: output, shape index: {}]  }
   0x1   :  { %2055 = sst [smem:[#allocation24_spill]] %s2034_s0 }
   0x2   :  { %2056 = sst [smem:[#allocation25_spill]] %s2035_s1 }
   0x3   :  { %2057 = sst [smem:[#allocation26_spill]] %s2050_s16 }
   0x4   :  { %2058 = sst [smem:[#allocation27_spill]] %s2051_s17 }
   0x5   :  { %22 = vsyncpa [#allocation3], 0 }
   0x6   :  { %23 = vsyncpa [#allocation6], 0 }
   0x7   :  { %24 = vsyncpa [#allocation9], 0 }
   0x8   :  { %25 = vsyncpa [#allocation12], 0 }
   0x9   :  { %26 = vsyncpa [#allocation15], 0 }
   0xa   :  { %27 = vsyncpa [#allocation4], 0  ;;  %s1680_s24 = smov [#allocation5]   ;;  %s2059_s28 = sld [smem:[#allocation25_spill]] }
   0xb   :  { %s45_s25 = sshll.u32 %s1680_s24, 4  ;;  %s46_s25 = int_to_ptr.vmem [resolvable:$true] %s45_s25 }
  0x10   :  { %s1448_s29 = scalar_lea.hbm %s2059_s28, 256 }
  0x11   :  { %p1449_p0 = scmp.ne.s32.totalorder %s2059_s28, %s1448_s29  ;;  %p1452_p1 = scmp.lt.u32.totalorder %s1448_s29, %s2059_s28 }
  0x13   :  { %p1454_p2 = pnand %p1452_p1, %p1449_p0 }
  0x15   :  { %1457 = shalt.err (!%p1454_p2)
}
  0x16   :  { %s1458_s1 = scalar_lea.vmem %s46_s25, 256  ;;  %p1463_p4 = scmp.lt.s32.totalorder %s46_s25, %s46_s25 }
  0x17   :  { %p1459_p3 = scmp.ne.s32.totalorder %s46_s25, %s1458_s1  ;;  %p1464_p5 = scmp.lt.s32.totalorder %s1458_s1, %s1458_s1 }
  0x19   :  { %p1465_p6 = por %p1464_p5, %p1463_p4 }
  0x1b   :  { %p1466_p7 = pnand %p1465_p6, %p1459_p3 }
  0x1d   :  { %1469 = shalt.err (!%p1466_p7)
}
  0x1e   :  { %s1681_s20 = smov 64   ;;  %s1682_s21 = smov 4  }
  0x1f   :  { %51 = dma.hbm_to_vmem [thread:$0]  %s2059_s28, 256, %s46_s25, [#allocation6], %s1681_s20, %s1681_s20, %s1682_s21  }
  0x20   :  { %s1683_s24 = smov [#allocation8]   ;;  %s1684_s27 = smov [#allocation11]  }
  0x21   :  { %s73_s26 = sshll.u32 %s1683_s24, 4  ;;  %s101_s29 = sshll.u32 %s1684_s27, 4  ;;  %s74_s26 = int_to_ptr.vmem [resolvable:$true] %s73_s26  ;;  %s102_s29 = int_to_ptr.vmem [resolvable:$true] %s101_s29 }
  0x22   :  { %s1470_s18 = scalar_lea.hbm %s2039_s5, 1024 }
  0x23   :  { %p1471_p8 = scmp.ne.s32.totalorder %s2039_s5, %s1470_s18  ;;  %p1474_p9 = scmp.lt.u32.totalorder %s1470_s18, %s2039_s5 }
  0x25   :  { %p1476_p10 = pnand %p1474_p9, %p1471_p8 }
  0x27   :  { %1479 = shalt.err (!%p1476_p10)
}
  0x28   :  { %s1480_s25 = scalar_lea.vmem %s74_s26, 1024  ;;  %p1485_p12 = scmp.lt.s32.totalorder %s74_s26, %s74_s26 }
  0x29   :  { %p1481_p11 = scmp.ne.s32.totalorder %s74_s26, %s1480_s25  ;;  %p1486_p13 = scmp.lt.s32.totalorder %s1480_s25, %s1480_s25 }
  0x2b   :  { %p1487_p0 = por %p1486_p13, %p1485_p12 }
  0x2d   :  { %p1488_p1 = pnand %p1487_p0, %p1481_p11 }
  0x2f   :  { %1491 = shalt.err (!%p1488_p1)
}
  0x30   :  { %79 = dma.hbm_to_vmem [thread:$0]  %s2039_s5, 1024, %s74_s26, [#allocation9], %s1681_s20, %s1681_s20, %s1682_s21  }
  0x31   :  { %s1492_s17 = scalar_lea.hbm %s2043_s9, 1024 }
  0x32   :  { %p1493_p2 = scmp.ne.s32.totalorder %s2043_s9, %s1492_s17  ;;  %p1496_p3 = scmp.lt.u32.totalorder %s1492_s17, %s2043_s9 }
  0x34   :  { %p1498_p4 = pnand %p1496_p3, %p1493_p2 }
  0x36   :  { %1501 = shalt.err (!%p1498_p4)
}
  0x37   :  { %s1502_s18 = scalar_lea.vmem %s102_s29, 1024  ;;  %p1507_p6 = scmp.lt.s32.totalorder %s102_s29, %s102_s29 }
  0x38   :  { %p1503_p5 = scmp.ne.s32.totalorder %s102_s29, %s1502_s18  ;;  %p1508_p7 = scmp.lt.s32.totalorder %s1502_s18, %s1502_s18 }
  0x3a   :  { %p1509_p8 = por %p1508_p7, %p1507_p6 }
  0x3c   :  { %p1510_p9 = pnand %p1509_p8, %p1503_p5 }
  0x3e   :  { %1513 = shalt.err (!%p1510_p9)
}
  0x3f   :  { %107 = dma.hbm_to_vmem [thread:$0]  %s2043_s9, 1024, %s102_s29, [#allocation12], %s1681_s20, %s1681_s20, %s1682_s21  }
  0x40   :  { %s1685_s19 = smov [#allocation14]   ;;  %s1686_s25 = smov [#allocation2]  }
  0x41   :  { %s129_s1 = sshll.u32 %s1685_s19, 4  ;;  %s33_s28 = sshll.u32 %s1686_s25, 4  ;;  %s130_s1 = int_to_ptr.vmem [resolvable:$true] %s129_s1  ;;  %s34_s28 = int_to_ptr.vmem [resolvable:$true] %s33_s28 }
  0x42   :  { %s1514_s16 = scalar_lea.hbm %s2047_s13, 1024 }
  0x43   :  { %p1515_p10 = scmp.ne.s32.totalorder %s2047_s13, %s1514_s16  ;;  %p1518_p11 = scmp.lt.u32.totalorder %s1514_s16, %s2047_s13 }
  0x45   :  { %p1520_p12 = pnand %p1518_p11, %p1515_p10 }
  0x47   :  { %1523 = shalt.err (!%p1520_p12)
}
  0x48   :  { %s1524_s9 = scalar_lea.vmem %s130_s1, 1024  ;;  %p1529_p0 = scmp.lt.s32.totalorder %s130_s1, %s130_s1 }
  0x49   :  { %p1525_p13 = scmp.ne.s32.totalorder %s130_s1, %s1524_s9  ;;  %p1530_p1 = scmp.lt.s32.totalorder %s1524_s9, %s1524_s9 }
  0x4b   :  { %p1531_p2 = por %p1530_p1, %p1529_p0 }
  0x4d   :  { %p1532_p3 = pnand %p1531_p2, %p1525_p13 }
  0x4f   :  { %1535 = shalt.err (!%p1532_p3)
}
  0x50   :  { %135 = dma.hbm_to_vmem [thread:$0]  %s2047_s13, 1024, %s130_s1, [#allocation15], %s1681_s20, %s1681_s20, %s1682_s21  }
  0x51   :  { %s2060_s26 = sld [smem:[#allocation24_spill]] }
  0x57   :  { %s1536_s19 = scalar_lea.hbm %s2060_s26, 256 }
  0x58   :  { %p1537_p4 = scmp.ne.s32.totalorder %s2060_s26, %s1536_s19  ;;  %p1540_p5 = scmp.lt.u32.totalorder %s1536_s19, %s2060_s26 }
  0x5a   :  { %p1542_p6 = pnand %p1540_p5, %p1537_p4 }
  0x5c   :  { %1545 = shalt.err (!%p1542_p6)
}
  0x5d   :  { %s1546_s17 = scalar_lea.vmem %s34_s28, 256  ;;  %p1551_p8 = scmp.lt.s32.totalorder %s34_s28, %s34_s28 }
  0x5e   :  { %p1547_p7 = scmp.ne.s32.totalorder %s34_s28, %s1546_s17  ;;  %p1552_p9 = scmp.lt.s32.totalorder %s1546_s17, %s1546_s17 }
  0x60   :  { %p1553_p10 = por %p1552_p9, %p1551_p8 }
  0x62   :  { %p1554_p11 = pnand %p1553_p10, %p1547_p7 }
  0x64   :  { %1557 = shalt.err (!%p1554_p11)
}
  0x65   :  { %s1687_s13 = smov 128   ;;  %s1688_s1 = smov 8  }
  0x66   :  { %39 = dma.hbm_to_vmem [thread:$0]  %s2060_s26, 256, %s34_s28, [#allocation3], %s1687_s13, %s1687_s13, %s1688_s1  }
  0x67   :  { %s1689_s0 = smov [#allocation7]   ;;  %s1690_s29 = smov [#allocation10]  }
  0x68   :  { %s59_s9 = sshll.u32 %s1689_s0, 4  ;;  %s87_s30 = sshll.u32 %s1690_s29, 4  ;;  %s60_s9 = int_to_ptr.vmem [resolvable:$true] %s59_s9  ;;  %s88_s30 = int_to_ptr.vmem [resolvable:$true] %s87_s30 }
  0x69   :  { %s1558_s19 = scalar_lea.hbm %s2037_s3, 1024 }
  0x6a   :  { %p1559_p12 = scmp.ne.s32.totalorder %s2037_s3, %s1558_s19  ;;  %p1562_p13 = scmp.lt.u32.totalorder %s1558_s19, %s2037_s3 }
  0x6c   :  { %p1564_p0 = pnand %p1562_p13, %p1559_p12 }
  0x6e   :  { %1567 = shalt.err (!%p1564_p0)
}
  0x6f   :  { %s1568_s28 = scalar_lea.vmem %s60_s9, 1024  ;;  %p1573_p2 = scmp.lt.s32.totalorder %s60_s9, %s60_s9 }
  0x70   :  { %p1569_p1 = scmp.ne.s32.totalorder %s60_s9, %s1568_s28  ;;  %p1574_p3 = scmp.lt.s32.totalorder %s1568_s28, %s1568_s28 }
  0x72   :  { %p1575_p4 = por %p1574_p3, %p1573_p2 }
  0x74   :  { %p1576_p5 = pnand %p1575_p4, %p1569_p1 }
  0x76   :  { %1579 = shalt.err (!%p1576_p5)
}
  0x77   :  { %65 = dma.hbm_to_vmem [thread:$0]  %s2037_s3, 1024, %s60_s9, [#allocation6], %s1681_s20, %s1681_s20, %s1682_s21  }
  0x78   :  { %s1580_s0 = scalar_lea.hbm %s2041_s7, 1024 }
  0x79   :  { %p1581_p6 = scmp.ne.s32.totalorder %s2041_s7, %s1580_s0  ;;  %p1584_p7 = scmp.lt.u32.totalorder %s1580_s0, %s2041_s7 }
  0x7b   :  { %p1586_p8 = pnand %p1584_p7, %p1581_p6 }
  0x7d   :  { %1589 = shalt.err (!%p1586_p8)
}
  0x7e   :  { %s1590_s25 = scalar_lea.vmem %s88_s30, 1024  ;;  %p1595_p10 = scmp.lt.s32.totalorder %s88_s30, %s88_s30 }
  0x7f   :  { %p1591_p9 = scmp.ne.s32.totalorder %s88_s30, %s1590_s25  ;;  %p1596_p11 = scmp.lt.s32.totalorder %s1590_s25, %s1590_s25 }
  0x81   :  { %p1597_p12 = por %p1596_p11, %p1595_p10 }
  0x83   :  { %p1598_p13 = pnand %p1597_p12, %p1591_p9 }
  0x85   :  { %1601 = shalt.err (!%p1598_p13)
}
  0x86   :  { %93 = dma.hbm_to_vmem [thread:$0]  %s2041_s7, 1024, %s88_s30, [#allocation9], %s1681_s20, %s1681_s20, %s1682_s21  }
  0x87   :  { %s1691_s22 = smov [#allocation13]   ;;  %s1692_s16 = smov [#allocation16]  }
  0x88   :  { %s115_s23 = sshll.u32 %s1691_s22, 4  ;;  %s143_s28 = sshll.u32 %s1692_s16, 4  ;;  %s116_s23 = int_to_ptr.vmem [resolvable:$true] %s115_s23  ;;  %s144_s28 = int_to_ptr.vmem [resolvable:$true] %s143_s28 }
  0x89   :  { %s1602_s24 = scalar_lea.hbm %s2045_s11, 1024 }
  0x8a   :  { %p1603_p0 = scmp.ne.s32.totalorder %s2045_s11, %s1602_s24  ;;  %p1606_p1 = scmp.lt.u32.totalorder %s1602_s24, %s2045_s11 }
  0x8c   :  { %p1608_p2 = pnand %p1606_p1, %p1603_p0 }
  0x8e   :  { %1611 = shalt.err (!%p1608_p2)
}
  0x8f   :  { %s1612_s7 = scalar_lea.vmem %s116_s23, 1024  ;;  %p1617_p4 = scmp.lt.s32.totalorder %s116_s23, %s116_s23 }
  0x90   :  { %p1613_p3 = scmp.ne.s32.totalorder %s116_s23, %s1612_s7  ;;  %p1618_p5 = scmp.lt.s32.totalorder %s1612_s7, %s1612_s7 }
  0x92   :  { %p1619_p6 = por %p1618_p5, %p1617_p4 }
  0x94   :  { %p1620_p7 = pnand %p1619_p6, %p1613_p3 }
  0x96   :  { %1623 = shalt.err (!%p1620_p7)
}
  0x97   :  { %121 = dma.hbm_to_vmem [thread:$0]  %s2045_s11, 1024, %s116_s23, [#allocation12], %s1681_s20, %s1681_s20, %s1682_s21  }
  0x98   :  { %s1624_s3 = scalar_lea.hbm %s2049_s15, 1024 }
  0x99   :  { %p1625_p8 = scmp.ne.s32.totalorder %s2049_s15, %s1624_s3  ;;  %p1628_p9 = scmp.lt.u32.totalorder %s1624_s3, %s2049_s15 }
  0x9b   :  { %p1630_p10 = pnand %p1628_p9, %p1625_p8 }
  0x9d   :  { %1633 = shalt.err (!%p1630_p10)
}
  0x9e   :  { %s1634_s17 = scalar_lea.vmem %s144_s28, 1024  ;;  %p1639_p12 = scmp.lt.s32.totalorder %s144_s28, %s144_s28 }
  0x9f   :  { %p1635_p11 = scmp.ne.s32.totalorder %s144_s28, %s1634_s17  ;;  %p1640_p13 = scmp.lt.s32.totalorder %s1634_s17, %s1634_s17 }
  0xa1   :  { %p1641_p0 = por %p1640_p13, %p1639_p12 }
  0xa3   :  { %p1642_p1 = pnand %p1641_p0, %p1635_p11 }
  0xa5   :  { %1645 = shalt.err (!%p1642_p1)
}
  0xa6   :  { %149 = dma.hbm_to_vmem [thread:$0]  %s2049_s15, 1024, %s144_s28, [#allocation15], %s1681_s20, %s1681_s20, %s1682_s21  }
  0xa7   :  { %1668 = dma.done.wait [#allocation3], 256  }
  0xa8   :  { %1669 = vsyncadd [#allocation3], 4294967040 }
  0xa9   :  { %1670 = dma.done.wait [#allocation6], 1280  }
  0xaa   :  { %1671 = vsyncadd [#allocation6], 4294966016 }
  0xab   :  { %1672 = dma.done.wait [#allocation9], 2048  }
  0xac   :  { %1673 = vsyncadd [#allocation9], 4294965248 }
  0xad   :  { %1674 = dma.done.wait [#allocation12], 2048  }
  0xae   :  { %1675 = vsyncadd [#allocation12], 4294965248 }
  0xaf   :  { %1676 = dma.done.wait [#allocation15], 2048  }
  0xb0   :  { %1677 = vsyncadd [#allocation15], 4294965248  ;;  %v1693_v0 = vmov 0.0   ;;  %vm1694_vm0 = vmmov 0   ;;  %v1390_v1 = vld [vmem:[#allocation5] sm:$0xff]   ;;  %v1391_v2 = vld [vmem:[#allocation5 + $0x8] sm:$0xff]  }
  0xb1   :  { %1226 = vmatprep.subr.bf16.mxu0 %v1693_v0  ;;  %1230 = vmatprep.mubr.msk.bf16.mxu0 %vm1694_vm0, %v1693_v0  ;;  %v180_v3 = vld [vmem:[#allocation2] sm:$0xff]  ;;  %v181_v4 = vld [vmem:[#allocation2 + $0x8] sm:$0xff]  ;;  %vm206_vm1 = vcmask 261120   ;;  %v1394_v8 = vld [vmem:[#allocation7 + $0x10] sm:$0xff]   ;;  %s2061_s30 = sld [smem:[#allocation26_spill]]  ;;  %s1695_s5 = smov [#allocation17]  }
  0xb2   :  { %1234 = vmatprep.subr.bf16.mxu1 %v1693_v0  ;;  %1250 = vmatprep.mubr.msk.bf16.mxu1 %vm1694_vm0, %v1693_v0  ;;  %v1392_v5 = vld [vmem:[#allocation7] sm:$0xff]   ;;  %v182_v6 = vpack.c.bf16 %v181_v4, %v180_v3  ;;  %v1393_v7 = vld [vmem:[#allocation7 + $0x8] sm:$0xff]   ;;  %v1395_v9 = vld [vmem:[#allocation7 + $0x18] sm:$0xff]   ;;  %s1077_s19 = sshll.u32 %s1695_s5, 4  ;;  %s1078_s19 = int_to_ptr.vmem [resolvable:$true] %s1077_s19 }
  0xb3   :  { %1227 = vmatpush3.bf16.msra.mxu0 %v1390_v1  ;;  %1235 = vmatpush3.bf16.msra.mxu1 %v1392_v5  ;;  %v1396_v10 = vld [vmem:[#allocation7 + $0x20] sm:$0xff]   ;;  %v1397_v11 = vld [vmem:[#allocation7 + $0x28] sm:$0xff]   ;;  %v1398_v12 = vld [vmem:[#allocation7 + $0x30] sm:$0xff]   ;;  %p1651_p3 = scmp.lt.s32.totalorder %s1078_s19, %s1078_s19 }
  0xb4   :  { %1228 = vmatprep.subr.bf16.mxu0 %v1693_v0  ;;  %1236 = vmatprep.subr.bf16.mxu1 %v1693_v0  ;;  %v1399_v13 = vld [vmem:[#allocation7 + $0x38] sm:$0xff]   ;;  %v1400_v14 = vld [vmem:[#allocation8] sm:$0xff]   ;;  %v1401_v15 = vld [vmem:[#allocation8 + $0x8] sm:$0xff]  }
  0xb5   :  { %v1402_v16 = vld [vmem:[#allocation8 + $0x10] sm:$0xff]   ;;  %v1403_v17 = vld [vmem:[#allocation8 + $0x18] sm:$0xff]   ;;  %v1404_v18 = vld [vmem:[#allocation8 + $0x20] sm:$0xff]  }
  0xb6   :  { %v1093_v19 = vld [vmem:[%s2036_s2] ss:$0 sm:$0xff]  ;;  %v1405_v31 = vld [vmem:[#allocation8 + $0x28] sm:$0xff]   ;;  %v1406_v32 = vld [vmem:[#allocation8 + $0x30] sm:$0xff]  }
  0xb7   :  { %1229 = vmatpush3.bf16.msra.mxu0 %v1391_v2  ;;  %1237 = vmatpush3.bf16.msra.mxu1 %v1393_v7  ;;  %v1407_v33 = vld [vmem:[#allocation8 + $0x38] sm:$0xff]   ;;  %v1408_v34 = vld [vmem:[#allocation10] sm:$0xff]   ;;  %v1409_v35 = vld [vmem:[#allocation10 + $0x8] sm:$0xff]  }
  0xb8   :  { %1254 = vmatprep.subr.bf16.mxu0 %v1693_v0  ;;  %1238 = vmatprep.subr.bf16.mxu1 %v1693_v0  ;;  %v1410_v36 = vld [vmem:[#allocation10 + $0x10] sm:$0xff]   ;;  %v1411_v37 = vld [vmem:[#allocation10 + $0x18] sm:$0xff]   ;;  %v1412_v38 = vld [vmem:[#allocation10 + $0x20] sm:$0xff]  }
  0xb9   :  { %v1097_v39 = vld [vmem:[%s2038_s4] ss:$0 sm:$0xff]  ;;  %v1413_v51 = vld [vmem:[#allocation10 + $0x28] sm:$0xff]   ;;  %v1414_v52 = vld [vmem:[#allocation10 + $0x30] sm:$0xff]  }
  0xba   :  { %1231 = vmatmul.mubr.msk.bf16.vlgmr.msra.gmra.mrb[0].mxu0 %vm206_vm1, %v182_v6  ;;  %v1415_v53 = vld [vmem:[#allocation10 + $0x38] sm:$0xff]   ;;  %v1416_v54 = vld [vmem:[#allocation11] sm:$0xff]   ;;  %v1417_v55 = vld [vmem:[#allocation11 + $0x8] sm:$0xff]  }
  0xbb   :  { %1270 = vmatprep.mubr.msk.bf16.mxu0 %vm1694_vm0, %v1693_v0  ;;  %1239 = vmatpush3.bf16.msra.mxu1 %v1394_v8  ;;  %v1418_v56 = vld [vmem:[#allocation11 + $0x10] sm:$0xff]   ;;  %v1419_v57 = vld [vmem:[#allocation11 + $0x18] sm:$0xff]   ;;  %v1420_v58 = vld [vmem:[#allocation11 + $0x20] sm:$0xff]  }
  0xbc   :  { %1240 = vmatprep.subr.bf16.mxu1 %v1693_v0  ;;  %1255 = vmatpush3.bf16.msra.mxu0 %v1400_v14  ;;  %v1106_v59 = vld [vmem:[%s2040_s6] ss:$0 sm:$0xff]  ;;  %v1421_v8 = vld [vmem:[#allocation11 + $0x28] sm:$0xff]   ;;  %v1427_v14 = vld [vmem:[#allocation13 + $0x18] sm:$0xff]  }
  0xbd   :  { %1256 = vmatprep.subr.bf16.mxu0 %v1693_v0 }
  0xbf   :  { %1241 = vmatpush3.bf16.msra.mxu1 %v1395_v9  ;;  %v1422_v9 = vld [vmem:[#allocation11 + $0x30] sm:$0xff]  }
  0xc0   :  { %1242 = vmatprep.subr.bf16.mxu1 %v1693_v0  ;;  %1257 = vmatpush3.bf16.msra.mxu0 %v1401_v15  ;;  %v1428_v15 = vld [vmem:[#allocation13 + $0x20] sm:$0xff]  }
  0xc1   :  { %1258 = vmatprep.subr.bf16.mxu0 %v1693_v0 }
  0xc3   :  { %1243 = vmatpush3.bf16.msra.mxu1 %v1396_v10  ;;  %v1423_v10 = vld [vmem:[#allocation11 + $0x38] sm:$0xff]  }
  0xc4   :  { %1244 = vmatprep.subr.bf16.mxu1 %v1693_v0  ;;  %1259 = vmatpush3.bf16.msra.mxu0 %v1402_v16  ;;  %v1115_v16 = vld [vmem:[%s2042_s8] ss:$0 sm:$0xff] }
  0xc5   :  { %1260 = vmatprep.subr.bf16.mxu0 %v1693_v0 }
  0xc7   :  { %1245 = vmatpush3.bf16.msra.mxu1 %v1397_v11  ;;  %v1424_v11 = vld [vmem:[#allocation13] sm:$0xff]  }
  0xc8   :  { %1246 = vmatprep.subr.bf16.mxu1 %v1693_v0  ;;  %1261 = vmatpush3.bf16.msra.mxu0 %v1403_v17 }
  0xc9   :  { %1262 = vmatprep.subr.bf16.mxu0 %v1693_v0 }
  0xcb   :  { %1247 = vmatpush3.bf16.msra.mxu1 %v1398_v12  ;;  %v1425_v12 = vld [vmem:[#allocation13 + $0x8] sm:$0xff]  }
  0xcc   :  { %1248 = vmatprep.subr.bf16.mxu1 %v1693_v0  ;;  %1263 = vmatpush3.bf16.msra.mxu0 %v1404_v18 }
  0xcd   :  { %1264 = vmatprep.subr.bf16.mxu0 %v1693_v0 }
  0xcf   :  { %1249 = vmatpush3.bf16.msra.mxu1 %v1399_v13  ;;  %v1426_v13 = vld [vmem:[#allocation13 + $0x10] sm:$0xff]  }
  0xd0   :  { %1274 = vmatprep.subr.bf16.mxu1 %v1693_v0  ;;  %1265 = vmatpush3.bf16.msra.mxu0 %v1405_v31  ;;  %v1432_v31 = vld [vmem:[#allocation14] sm:$0xff]  }
  0xd1   :  { %1266 = vmatprep.subr.bf16.mxu0 %v1693_v0 }
  0xd4   :  { %1267 = vmatpush3.bf16.msra.mxu0 %v1406_v32  ;;  %v1433_v32 = vld [vmem:[#allocation14 + $0x8] sm:$0xff]  }
  0xd5   :  { %1268 = vmatprep.subr.bf16.mxu0 %v1693_v0 }
  0xd8   :  { %1269 = vmatpush3.bf16.msra.mxu0 %v1407_v33  ;;  %v1434_v33 = vld [vmem:[#allocation14 + $0x10] sm:$0xff]  }
  0xd9   :  { %1294 = vmatprep.subr.bf16.mxu0 %v1693_v0 }
 0x18d   :  { %v244_v20 = vpop.f32.mrb[0].mxu0 }
 0x18e   :  { %v245_v21 = vadd.f32 %v1093_v19, %v244_v20  ;;  %v1232_v22 = vpop.f32.mrb[1].mxu0 }
 0x18f   :  { %v247_v23 = vpop.f32.mrb[2].mxu0 }
 0x190   :  { %v251_v24 = vmul.f32 0.01, %v245_v21  ;;  %v248_v25 = vadd.f32 %v1093_v19, %v247_v23  ;;  %v1233_v26 = vpop.f32.mrb[3].mxu0 }
 0x192   :  { %v252_v27 = vmul.f32 0.01, %v248_v25  ;;  %v253_v28 = vmax.f32 %v245_v21, %v251_v24 }
 0x194   :  { %v254_v29 = vmax.f32 %v248_v25, %v252_v27 }
 0x196   :  { %v255_v30 = vpack.c.bf16 %v254_v29, %v253_v28  ;;  %v1429_v28 = vld [vmem:[#allocation13 + $0x28] sm:$0xff]   ;;  %v1430_v29 = vld [vmem:[#allocation13 + $0x30] sm:$0xff]  }
 0x198   :  { %1251 = vmatmul.mubr.bf16.vlgmr.msra.gmra.mrb[0].mxu1 %v255_v30  ;;  %v1431_v30 = vld [vmem:[#allocation13 + $0x38] sm:$0xff]  }
 0x199   :  { %1290 = vmatprep.mubr.msk.bf16.mxu1 %vm1694_vm0, %v1693_v0  ;;  %1275 = vmatpush3.bf16.msra.mxu1 %v1408_v34  ;;  %v1435_v34 = vld [vmem:[#allocation14 + $0x18] sm:$0xff]  }
 0x19a   :  { %1276 = vmatprep.subr.bf16.mxu1 %v1693_v0 }
 0x19d   :  { %1277 = vmatpush3.bf16.msra.mxu1 %v1409_v35  ;;  %v1436_v35 = vld [vmem:[#allocation14 + $0x20] sm:$0xff]  }
 0x19e   :  { %1278 = vmatprep.subr.bf16.mxu1 %v1693_v0 }
 0x1a1   :  { %1279 = vmatpush3.bf16.msra.mxu1 %v1410_v36  ;;  %v1124_v36 = vld [vmem:[%s2044_s10] ss:$0 sm:$0xff] }
 0x1a2   :  { %1280 = vmatprep.subr.bf16.mxu1 %v1693_v0 }
 0x1a5   :  { %1281 = vmatpush3.bf16.msra.mxu1 %v1411_v37 }
 0x1a6   :  { %1282 = vmatprep.subr.bf16.mxu1 %v1693_v0 }
 0x1a9   :  { %1283 = vmatpush3.bf16.msra.mxu1 %v1412_v38 }
 0x1aa   :  { %1284 = vmatprep.subr.bf16.mxu1 %v1693_v0 }
 0x1ad   :  { %1285 = vmatpush3.bf16.msra.mxu1 %v1413_v51  ;;  %v1440_v51 = vld [vmem:[#allocation16] sm:$0xff]  }
 0x1ae   :  { %1286 = vmatprep.subr.bf16.mxu1 %v1693_v0 }
 0x1b1   :  { %1287 = vmatpush3.bf16.msra.mxu1 %v1414_v52  ;;  %v1441_v52 = vld [vmem:[#allocation16 + $0x8] sm:$0xff]  }
 0x1b2   :  { %1288 = vmatprep.subr.bf16.mxu1 %v1693_v0 }
 0x1b5   :  { %1289 = vmatpush3.bf16.msra.mxu1 %v1415_v53  ;;  %v1442_v53 = vld [vmem:[#allocation16 + $0x10] sm:$0xff]  }
 0x1b6   :  { %1314 = vmatprep.subr.bf16.mxu1 %v1693_v0 }
 0x26b   :  { %v361_v40 = vpop.f32.mrb[0].mxu1 }
 0x26c   :  { %v362_v41 = vadd.f32 %v1097_v39, %v361_v40  ;;  %v1252_v42 = vpop.f32.mrb[1].mxu1 }
 0x26d   :  { %v364_v43 = vpop.f32.mrb[2].mxu1 }
 0x26e   :  { %v368_v44 = vmul.f32 0.01, %v362_v41  ;;  %v365_v45 = vadd.f32 %v1097_v39, %v364_v43  ;;  %v1253_v46 = vpop.f32.mrb[3].mxu1 }
 0x270   :  { %v369_v47 = vmul.f32 0.01, %v365_v45  ;;  %v370_v48 = vmax.f32 %v362_v41, %v368_v44 }
 0x272   :  { %v371_v49 = vmax.f32 %v365_v45, %v369_v47 }
 0x274   :  { %v372_v50 = vpack.c.bf16 %v371_v49, %v370_v48  ;;  %v1437_v48 = vld [vmem:[#allocation14 + $0x28] sm:$0xff]   ;;  %v1438_v49 = vld [vmem:[#allocation14 + $0x30] sm:$0xff]  }
 0x276   :  { %1271 = vmatmul.mubr.bf16.vlgmr.msra.gmra.mrb[4].mxu0 %v372_v50  ;;  %v1439_v50 = vld [vmem:[#allocation14 + $0x38] sm:$0xff]  }
 0x277   :  { %1310 = vmatprep.mubr.msk.bf16.mxu0 %vm1694_vm0, %v1693_v0  ;;  %1295 = vmatpush3.bf16.msra.mxu0 %v1416_v54  ;;  %v1443_v54 = vld [vmem:[#allocation16 + $0x18] sm:$0xff]  }
 0x278   :  { %1296 = vmatprep.subr.bf16.mxu0 %v1693_v0 }
 0x27b   :  { %1297 = vmatpush3.bf16.msra.mxu0 %v1417_v55  ;;  %v1444_v55 = vld [vmem:[#allocation16 + $0x20] sm:$0xff]  }
 0x27c   :  { %1298 = vmatprep.subr.bf16.mxu0 %v1693_v0 }
 0x27f   :  { %1299 = vmatpush3.bf16.msra.mxu0 %v1418_v56  ;;  %v1133_v56 = vld [vmem:[%s2046_s12] ss:$0 sm:$0xff] }
 0x280   :  { %1300 = vmatprep.subr.bf16.mxu0 %v1693_v0 }
 0x283   :  { %1301 = vmatpush3.bf16.msra.mxu0 %v1419_v57 }
 0x284   :  { %1302 = vmatprep.subr.bf16.mxu0 %v1693_v0 }
 0x287   :  { %1303 = vmatpush3.bf16.msra.mxu0 %v1420_v58 }
 0x288   :  { %1304 = vmatprep.subr.bf16.mxu0 %v1693_v0 }
 0x28b   :  { %1305 = vmatpush3.bf16.msra.mxu0 %v1421_v8  ;;  %v1142_v8 = vld [vmem:[%s2048_s14] ss:$0 sm:$0xff]  ;;  %s1646_s14 = scalar_lea.vmem %s1078_s19, 256 }
 0x28c   :  { %1306 = vmatprep.subr.bf16.mxu0 %v1693_v0  ;;  %p1647_p2 = scmp.ne.s32.totalorder %s1078_s19, %s1646_s14  ;;  %p1652_p4 = scmp.lt.s32.totalorder %s1646_s14, %s1646_s14 }
 0x28e   :  { %p1653_p5 = por %p1652_p4, %p1651_p3 }
 0x28f   :  { %1307 = vmatpush3.bf16.msra.mxu0 %v1422_v9 }
 0x290   :  { %1308 = vmatprep.subr.bf16.mxu0 %v1693_v0  ;;  %p1654_p6 = pnand %p1653_p5, %p1647_p2 }
 0x293   :  { %1309 = vmatpush3.bf16.msra.mxu0 %v1423_v10 }
 0x294   :  { %1334 = vmatprep.subr.bf16.mxu0 %v1693_v0 }
 0x349   :  { %v478_v60 = vpop.f32.mrb[4].mxu0 }
 0x34a   :  { %v479_v61 = vadd.f32 %v1106_v59, %v478_v60  ;;  %v1272_v62 = vpop.f32.mrb[5].mxu0 }
 0x34b   :  { %v481_v63 = vpop.f32.mrb[6].mxu0 }
 0x34c   :  { %v485_v1 = vmul.f32 0.01, %v479_v61  ;;  %v482_v2 = vadd.f32 %v1106_v59, %v481_v63  ;;  %v1273_v3 = vpop.f32.mrb[7].mxu0 }
 0x34e   :  { %v486_v4 = vmul.f32 0.01, %v482_v2  ;;  %v487_v5 = vmax.f32 %v479_v61, %v485_v1 }
 0x350   :  { %v488_v6 = vmax.f32 %v482_v2, %v486_v4 }
 0x352   :  { %v489_v7 = vpack.c.bf16 %v488_v6, %v487_v5  ;;  %v1445_v5 = vld [vmem:[#allocation16 + $0x28] sm:$0xff]   ;;  %v1446_v6 = vld [vmem:[#allocation16 + $0x30] sm:$0xff]  }
 0x354   :  { %1291 = vmatmul.mubr.bf16.vlgmr.msra.gmra.mrb[4].mxu1 %v489_v7  ;;  %v1447_v7 = vld [vmem:[#allocation16 + $0x38] sm:$0xff]  }
 0x355   :  { %1330 = vmatprep.mubr.msk.bf16.mxu1 %vm1694_vm0, %v1693_v0  ;;  %1315 = vmatpush3.bf16.msra.mxu1 %v1424_v11 }
 0x356   :  { %1316 = vmatprep.subr.bf16.mxu1 %v1693_v0 }
 0x359   :  { %1317 = vmatpush3.bf16.msra.mxu1 %v1425_v12 }
 0x35a   :  { %1318 = vmatprep.subr.bf16.mxu1 %v1693_v0 }
 0x35d   :  { %1319 = vmatpush3.bf16.msra.mxu1 %v1426_v13 }
 0x35e   :  { %1320 = vmatprep.subr.bf16.mxu1 %v1693_v0 }
 0x361   :  { %1321 = vmatpush3.bf16.msra.mxu1 %v1427_v14 }
 0x362   :  { %1322 = vmatprep.subr.bf16.mxu1 %v1693_v0 }
 0x365   :  { %1323 = vmatpush3.bf16.msra.mxu1 %v1428_v15 }
 0x366   :  { %1324 = vmatprep.subr.bf16.mxu1 %v1693_v0 }
 0x369   :  { %1325 = vmatpush3.bf16.msra.mxu1 %v1429_v28 }
 0x36a   :  { %1326 = vmatprep.subr.bf16.mxu1 %v1693_v0 }
 0x36d   :  { %1327 = vmatpush3.bf16.msra.mxu1 %v1430_v29 }
 0x36e   :  { %1328 = vmatprep.subr.bf16.mxu1 %v1693_v0 }
 0x371   :  { %1329 = vmatpush3.bf16.msra.mxu1 %v1431_v30 }
 0x372   :  { %1354 = vmatprep.subr.bf16.mxu1 %v1693_v0 }
 0x427   :  { %v595_v17 = vpop.f32.mrb[4].mxu1 }
 0x428   :  { %v596_v18 = vadd.f32 %v1115_v16, %v595_v17  ;;  %v1292_v19 = vpop.f32.mrb[5].mxu1 }
 0x429   :  { %v598_v20 = vpop.f32.mrb[6].mxu1 }
 0x42a   :  { %v602_v21 = vmul.f32 0.01, %v596_v18  ;;  %v599_v22 = vadd.f32 %v1115_v16, %v598_v20  ;;  %v1293_v23 = vpop.f32.mrb[7].mxu1 }
 0x42c   :  { %v603_v24 = vmul.f32 0.01, %v599_v22  ;;  %v604_v25 = vmax.f32 %v596_v18, %v602_v21 }
 0x42e   :  { %v605_v26 = vmax.f32 %v599_v22, %v603_v24 }
 0x430   :  { %v606_v27 = vpack.c.bf16 %v605_v26, %v604_v25 }
 0x432   :  { %1311 = vmatmul.mubr.bf16.vlgmr.msra.gmra.mrb[8].mxu0 %v606_v27 }
 0x433   :  { %1350 = vmatprep.mubr.msk.bf16.mxu0 %vm1694_vm0, %v1693_v0  ;;  %1335 = vmatpush3.bf16.msra.mxu0 %v1432_v31 }
 0x434   :  { %1336 = vmatprep.subr.bf16.mxu0 %v1693_v0 }
 0x437   :  { %1337 = vmatpush3.bf16.msra.mxu0 %v1433_v32 }
 0x438   :  { %1338 = vmatprep.subr.bf16.mxu0 %v1693_v0 }
 0x43b   :  { %1339 = vmatpush3.bf16.msra.mxu0 %v1434_v33 }
 0x43c   :  { %1340 = vmatprep.subr.bf16.mxu0 %v1693_v0 }
 0x43f   :  { %1341 = vmatpush3.bf16.msra.mxu0 %v1435_v34 }
 0x440   :  { %1342 = vmatprep.subr.bf16.mxu0 %v1693_v0 }
 0x443   :  { %1343 = vmatpush3.bf16.msra.mxu0 %v1436_v35 }
 0x444   :  { %1344 = vmatprep.subr.bf16.mxu0 %v1693_v0 }
 0x447   :  { %1345 = vmatpush3.bf16.msra.mxu0 %v1437_v48 }
 0x448   :  { %1346 = vmatprep.subr.bf16.mxu0 %v1693_v0 }
 0x44b   :  { %1347 = vmatpush3.bf16.msra.mxu0 %v1438_v49 }
 0x44c   :  { %1348 = vmatprep.subr.bf16.mxu0 %v1693_v0 }
 0x44f   :  { %1349 = vmatpush3.bf16.msra.mxu0 %v1439_v50 }
 0x505   :  { %v712_v37 = vpop.f32.mrb[8].mxu0 }
 0x506   :  { %v713_v38 = vadd.f32 %v1124_v36, %v712_v37  ;;  %v1312_v39 = vpop.f32.mrb[9].mxu0 }
 0x507   :  { %v715_v40 = vpop.f32.mrb[10].mxu0 }
 0x508   :  { %v719_v41 = vmul.f32 0.01, %v713_v38  ;;  %v716_v42 = vadd.f32 %v1124_v36, %v715_v40  ;;  %v1313_v43 = vpop.f32.mrb[11].mxu0 }
 0x50a   :  { %v720_v44 = vmul.f32 0.01, %v716_v42  ;;  %v721_v45 = vmax.f32 %v713_v38, %v719_v41 }
 0x50c   :  { %v722_v46 = vmax.f32 %v716_v42, %v720_v44 }
 0x50e   :  { %v723_v47 = vpack.c.bf16 %v722_v46, %v721_v45 }
 0x510   :  { %1331 = vmatmul.mubr.bf16.vlgmr.msra.gmra.mrb[8].mxu1 %v723_v47 }
 0x511   :  { %1370 = vmatprep.mubr.msk.bf16.mxu1 %vm1694_vm0, %v1693_v0  ;;  %1355 = vmatpush3.bf16.msra.mxu1 %v1440_v51 }
 0x512   :  { %1356 = vmatprep.subr.bf16.mxu1 %v1693_v0 }
 0x515   :  { %1357 = vmatpush3.bf16.msra.mxu1 %v1441_v52 }
 0x516   :  { %1358 = vmatprep.subr.bf16.mxu1 %v1693_v0 }
 0x519   :  { %1359 = vmatpush3.bf16.msra.mxu1 %v1442_v53 }
 0x51a   :  { %1360 = vmatprep.subr.bf16.mxu1 %v1693_v0 }
 0x51d   :  { %1361 = vmatpush3.bf16.msra.mxu1 %v1443_v54 }
 0x51e   :  { %1362 = vmatprep.subr.bf16.mxu1 %v1693_v0 }
 0x521   :  { %1363 = vmatpush3.bf16.msra.mxu1 %v1444_v55 }
 0x522   :  { %1364 = vmatprep.subr.bf16.mxu1 %v1693_v0 }
 0x525   :  { %1365 = vmatpush3.bf16.msra.mxu1 %v1445_v5 }
 0x526   :  { %1366 = vmatprep.subr.bf16.mxu1 %v1693_v0 }
 0x529   :  { %1367 = vmatpush3.bf16.msra.mxu1 %v1446_v6 }
 0x52a   :  { %1368 = vmatprep.subr.bf16.mxu1 %v1693_v0  ;;  %v1151_v0 = vld [vmem:[%s2061_s30] ss:$0 sm:$0xff] }
 0x52d   :  { %1369 = vmatpush3.bf16.msra.mxu1 %v1447_v7 }
 0x5e3   :  { %v829_v57 = vpop.f32.mrb[8].mxu1 }
 0x5e4   :  { %v830_v58 = vadd.f32 %v1133_v56, %v829_v57  ;;  %v1332_v59 = vpop.f32.mrb[9].mxu1 }
 0x5e5   :  { %v832_v60 = vpop.f32.mrb[10].mxu1 }
 0x5e6   :  { %v836_v61 = vmul.f32 0.01, %v830_v58  ;;  %v833_v62 = vadd.f32 %v1133_v56, %v832_v60  ;;  %v1333_v63 = vpop.f32.mrb[11].mxu1 }
 0x5e8   :  { %v837_v1 = vmul.f32 0.01, %v833_v62  ;;  %v838_v2 = vmax.f32 %v830_v58, %v836_v61 }
 0x5ea   :  { %v839_v3 = vmax.f32 %v833_v62, %v837_v1 }
 0x5ec   :  { %v840_v4 = vpack.c.bf16 %v839_v3, %v838_v2 }
 0x5ee   :  { %1351 = vmatmul.mubr.bf16.vlgmr.msra.gmra.mrb[12].mxu0 %v840_v4 }
 0x6c1   :  { %v946_v9 = vpop.f32.mrb[12].mxu0 }
 0x6c2   :  { %v947_v10 = vadd.f32 %v1142_v8, %v946_v9  ;;  %v1352_v11 = vpop.f32.mrb[13].mxu0 }
 0x6c3   :  { %v949_v12 = vpop.f32.mrb[14].mxu0 }
 0x6c4   :  { %v953_v13 = vmul.f32 0.01, %v947_v10  ;;  %v950_v14 = vadd.f32 %v1142_v8, %v949_v12  ;;  %v1353_v15 = vpop.f32.mrb[15].mxu0 }
 0x6c6   :  { %v954_v16 = vmul.f32 0.01, %v950_v14  ;;  %v955_v17 = vmax.f32 %v947_v10, %v953_v13 }
 0x6c8   :  { %v956_v18 = vmax.f32 %v950_v14, %v954_v16 }
 0x6ca   :  { %v957_v19 = vpack.c.bf16 %v956_v18, %v955_v17 }
 0x6cc   :  { %1371 = vmatmul.mubr.bf16.vlgmr.msra.gmra.mrb[12].mxu1 %v957_v19 }
 0x79f   :  { %v1063_v20 = vpop.f32.mrb[12].mxu1 }
 0x7a0   :  { %v1064_v21 = vadd.f32 %v1151_v0, %v1063_v20  ;;  %v1372_v22 = vpop.f32.mrb[13].mxu1 }
 0x7a1   :  { %v1066_v23 = vpop.f32.mrb[14].mxu1 }
 0x7a2   :  { %1070 = vst [vmem:[#allocation17] sm:$0xff] %v1064_v21  ;;  %v1067_v24 = vadd.f32 %v1151_v0, %v1066_v23  ;;  %v1373_v25 = vpop.f32.mrb[15].mxu1 }
 0x7a4   :  { %1071 = vst [vmem:[#allocation17 + $0x8] sm:$0xff] %v1067_v24 }
 0x7a5   :  { %1657 = shalt.err (!%p1654_p6)
}
 0x7a6   :  { %s2062_s9 = sld [smem:[#allocation27_spill]] }
 0x7ac   :  { %s1658_s22 = scalar_lea.hbm %s2062_s9, 256 }
 0x7ad   :  { %p1659_p7 = scmp.ne.s32.totalorder %s2062_s9, %s1658_s22  ;;  %p1662_p8 = scmp.lt.u32.totalorder %s1658_s22, %s2062_s9 }
 0x7af   :  { %p1664_p9 = pnand %p1662_p8, %p1659_p7 }
 0x7b1   :  { %1667 = shalt.err (!%p1664_p9)
}
 0x7b2   :  { %1083 = dma.vmem_to_hbm [thread:$0]  %s1078_s19, 256, %s2062_s9, [#allocation4], %s1687_s13, %s1687_s13, %s1688_s1  }
 0x7b3   :  { %1678 = dma.done.wait [#allocation4], 256  }
 0x7b4   :  { %1679 = vsyncadd [#allocation4], 4294967040 }
 0x7b5   :  { %1087 = vsyncpa [#allocation3], 1 }
 0x7b6   :  { %1088 = vsyncpa [#allocation6], 1 }
 0x7b7   :  { %1089 = vsyncpa [#allocation9], 1 }
 0x7b8   :  { %1090 = vsyncpa [#allocation12], 1 }
 0x7b9   :  { %1091 = vsyncpa [#allocation15], 1 }
 0x7ba   :  { %1092 = vsyncpa [#allocation4], 1 }

</bundles_post_ra>
